<compile_context>
chip_gen: v7x
topology: tpu7x:2x2x1
jax: 0.10.0
libtpu: 0.0.40
codegen_flags: <defaults>
</compile_context>

<pallas_src>
import jax
import jax.numpy as jnp
from jax.experimental import pallas as pl
from jax.experimental.pallas import tpu as pltpu

EPS = 1e-5            # nn.BatchNorm1d default eps
LEAKY_SLOPE = 0.01    # F.leaky_relu default negative_slope
NEG_INF = -1e30       # keep softmax masking path in f32


# ------------------------------ Pallas kernel -------------------------------

def _nas_layer_kernel(x_ref, adj_ref, gamma_ref, beta_ref, wfc_ref, vlr_ref, o_ref):
    """Fused BatchNorm1d + H GAT heads (AttentionPrepare -> GATReduce(sum) -> GATFinalize)."""
    x = x_ref[...]                                                   # (N, Cin)
    adj = adj_ref[...]                                               # (N_dst, N_src)

    # BatchNorm1d, training-mode semantics: batch mean / biased batch var, affine.
    mean = jnp.mean(x, axis=0, keepdims=True)
    var = jnp.mean((x - mean) ** 2, axis=0, keepdims=True)
    h = (x - mean) * jax.lax.rsqrt(var + EPS) * gamma_ref[...] + beta_ref[...]   # (N, Cin)

    mask = adj > 0.0
    num_heads = wfc_ref.shape[0]

    head_outs = []
    for hid in range(num_heads):                                     # static unroll (H is tiny)
        wfc = wfc_ref[hid]                                           # (Cin, Cout)
        vlr = vlr_ref[hid]                                           # (Cin, 2) = [Wfc@Wl | Wfc@Wr]

        # AttentionPrepare: ft = h W; scores via folded projections (independent of ft).
        ft = jnp.dot(h, wfc, preferred_element_type=jnp.float32)     # (N, Cout)
        a12 = jnp.dot(h, vlr, preferred_element_type=jnp.float32)    # (N, 2)
        a1 = a12[:, 0:1]                                             # dst score (N, 1)
        a2 = a12[:, 1:2]                                             # src score (N, 1)

        # GATReduce: e_ij = softmax_j( leaky_relu(a1_i + a2_j) ) over in-neighbors j.
        s = a1 + a2.T                                                # (N, N); tiny XLU relayout
        s = jnp.where(s >= 0, s, LEAKY_SLOPE * s)                    # leaky_relu
        s = jnp.where(mask, s, NEG_INF)
        m = jnp.max(s, axis=1, keepdims=True)
        e = jnp.exp(s - m)
        e = jnp.where(mask, e, 0.0)
        denom = jnp.maximum(jnp.sum(e, axis=1, keepdims=True), 1e-30)  # guard zero in-degree
        e = e / denom

        # SumAggregator over (e * ft_src), then GATFinalize: relu, no residual.
        accum = jnp.dot(e, ft, preferred_element_type=jnp.float32)   # (N, Cout)
        head_outs.append(jnp.maximum(accum, 0.0))

    # concat=True: torch.cat([head0, head1, ...], dim=1) — single lane-dense full-block store.
    o_ref[...] = jnp.concatenate(head_outs, axis=1)


# -------------------------------- wrapper -----------------------------------

def nas_layer_forward(x, adj, gamma, beta, wfc, wl, wr):
    N, Cin = x.shape
    H, _, Cout = wfc.shape

    # Fold attention projections at trace time: (H, Cin, 2), constant-folded by XLA.
    vlr = jnp.concatenate([jnp.matmul(wfc, wl), jnp.matmul(wfc, wr)], axis=-1)

    flops = 2 * H * (N * Cin * Cout + N * Cin * 2 + N * N * Cout) + 6 * H * N * N
    transcendentals = H * N * N
    bytes_accessed = 4 * (N * Cin + N * N + 2 * Cin + H * Cin * Cout + H * Cin * 2 + N * H * Cout)

    return pl.pallas_call(
        _nas_layer_kernel,
        out_shape=jax.ShapeDtypeStruct((N, H * Cout), jnp.float32),
        cost_estimate=pl.CostEstimate(
            flops=flops,
            transcendentals=transcendentals,
            bytes_accessed=bytes_accessed,
        ),
    )(x, adj, gamma, beta, wfc, vlr)


# ------------------------------- reference ----------------------------------

def nas_layer_reference(x, adj, gamma, beta, wfc, wl, wr):
    mean = x.mean(0, keepdims=True)
    var = ((x - mean) ** 2).mean(0, keepdims=True)
    h = (x - mean) / jnp.sqrt(var + EPS) * gamma + beta
    outs = []
    mask = adj > 0.0
    for hid in range(wfc.shape[0]):
        ft = h @ wfc[hid]
        a1 = ft @ wl[hid]
        a2 = ft @ wr[hid]
        s = a1 + a2.T
        s = jnp.where(s >= 0, s, LEAKY_SLOPE * s)
        s = jnp.where(mask, s, -jnp.inf)
        e = jax.nn.softmax(s, axis=1)
        e = jnp.where(mask, e, 0.0)
        outs.append(jnp.maximum(e @ ft, 0.0))
    return jnp.concatenate(outs, axis=1)


# ---------------------------------- main -------------------------------------

if __name__ == "__main__":
    N, Cin, Cout, H = 16, 8, 8, 2   # nodes, in_channels, out_channels, head_num

    key = jax.random.PRNGKey(0)
    k_x, k_adj, k_g, k_b, k_wfc, k_wl, k_wr = jax.random.split(key, 7)

    x = jax.random.normal(k_x, (N, Cin), dtype=jnp.float32)

    # Deterministic random digraph with self-loops (every node has >= 1 in-neighbor).
    adj = (jax.random.uniform(k_adj, (N, N)) < 0.3).astype(jnp.float32)
    adj = jnp.maximum(adj, jnp.eye(N, dtype=jnp.float32))

    # BatchNorm1d affine params (synthetic, deterministic).
    gamma = 1.0 + 0.1 * jax.random.normal(k_g, (1, Cin), dtype=jnp.float32)
    beta = 0.1 * jax.random.normal(k_b, (1, Cin), dtype=jnp.float32)

    # Per-head AttentionPrepare weights (xavier-ish scale), stored as (in, out).
    wfc = jax.random.normal(k_wfc, (H, Cin, Cout), dtype=jnp.float32) * (1.414 / jnp.sqrt(Cin))
    wl = jax.random.normal(k_wl, (H, Cout, 1), dtype=jnp.float32) * (1.414 / jnp.sqrt(Cout))
    wr = jax.random.normal(k_wr, (H, Cout, 1), dtype=jnp.float32) * (1.414 / jnp.sqrt(Cout))

    out = nas_layer_forward(x, adj, gamma, beta, wfc, wl, wr)
    out = jax.block_until_ready(out)

    ref = nas_layer_reference(x, adj, gamma, beta, wfc, wl, wr)
    assert out.shape == (N, H * Cout), out.shape
    assert jnp.allclose(out, ref, atol=1e-4, rtol=1e-4), float(jnp.max(jnp.abs(out - ref)))

    print("KERNEL_OK")
</pallas_src>

<mosaic_0001>
module attributes {stable_mosaic.version = 11 : i64} {
  func.func @_nas_layer_kernel(%arg0: memref<16x8xf32, #tpu.memory_space<vmem>>, %arg1: memref<16x16xf32, #tpu.memory_space<vmem>>, %arg2: memref<1x8xf32, #tpu.memory_space<vmem>>, %arg3: memref<1x8xf32, #tpu.memory_space<vmem>>, %arg4: memref<2x8x8xf32, #tpu.memory_space<vmem>>, %arg5: memref<2x8x2xf32, #tpu.memory_space<vmem>>, %arg6: memref<16x16xf32, #tpu.memory_space<vmem>>) attributes {dimension_semantics = [], scalar_prefetch = 0 : i64, scratch_operands = 0 : i64, tpu.core_type = #tpu.core_type<tc>} {
    %c0 = arith.constant 0 : index
    %c0_0 = arith.constant 0 : index
    %0 = vector.load %arg0[%c0, %c0_0] : memref<16x8xf32, #tpu.memory_space<vmem>>, vector<16x8xf32>
    %c0_1 = arith.constant 0 : index
    %c0_2 = arith.constant 0 : index
    %1 = vector.load %arg1[%c0_1, %c0_2] : memref<16x16xf32, #tpu.memory_space<vmem>>, vector<16x16xf32>
    %cst = arith.constant dense<0.000000e+00> : vector<8xf32>
    %2 = vector.multi_reduction <add>, %0, %cst [0] : vector<16x8xf32> to vector<8xf32>
    %3 = vector.shape_cast %2 : vector<8xf32> to vector<1x8xf32>
    %cst_3 = arith.constant 1.600000e+01 : f32
    %4 = vector.broadcast %cst_3 : f32 to vector<1x8xf32>
    %5 = arith.divf %3, %4 : vector<1x8xf32>
    %6 = vector.broadcast %5 : vector<1x8xf32> to vector<16x8xf32>
    %7 = arith.subf %0, %6 : vector<16x8xf32>
    %8 = arith.mulf %7, %7 : vector<16x8xf32>
    %cst_4 = arith.constant dense<0.000000e+00> : vector<8xf32>
    %9 = vector.multi_reduction <add>, %8, %cst_4 [0] : vector<16x8xf32> to vector<8xf32>
    %10 = vector.shape_cast %9 : vector<8xf32> to vector<1x8xf32>
    %cst_5 = arith.constant 1.600000e+01 : f32
    %11 = vector.broadcast %cst_5 : f32 to vector<1x8xf32>
    %12 = arith.divf %10, %11 : vector<1x8xf32>
    %13 = vector.broadcast %5 : vector<1x8xf32> to vector<16x8xf32>
    %14 = arith.subf %0, %13 : vector<16x8xf32>
    %cst_6 = arith.constant 9.99999974E-6 : f32
    %15 = vector.broadcast %cst_6 : f32 to vector<1x8xf32>
    %16 = arith.addf %12, %15 : vector<1x8xf32>
    %17 = math.rsqrt %16 : vector<1x8xf32>
    %18 = vector.broadcast %17 : vector<1x8xf32> to vector<16x8xf32>
    %19 = arith.mulf %14, %18 : vector<16x8xf32>
    %c0_7 = arith.constant 0 : index
    %c0_8 = arith.constant 0 : index
    %20 = vector.load %arg2[%c0_7, %c0_8] : memref<1x8xf32, #tpu.memory_space<vmem>>, vector<1x8xf32>
    %21 = vector.broadcast %20 : vector<1x8xf32> to vector<16x8xf32>
    %22 = arith.mulf %19, %21 : vector<16x8xf32>
    %c0_9 = arith.constant 0 : index
    %c0_10 = arith.constant 0 : index
    %23 = vector.load %arg3[%c0_9, %c0_10] : memref<1x8xf32, #tpu.memory_space<vmem>>, vector<1x8xf32>
    %24 = vector.broadcast %23 : vector<1x8xf32> to vector<16x8xf32>
    %25 = arith.addf %22, %24 : vector<16x8xf32>
    %cst_11 = arith.constant 0.000000e+00 : f32
    %26 = vector.broadcast %cst_11 : f32 to vector<16x16xf32>
    %27 = arith.cmpf ogt, %1, %26 : vector<16x16xf32>
    %c0_12 = arith.constant 0 : index
    %c0_13 = arith.constant 0 : index
    %c0_14 = arith.constant 0 : index
    %28 = vector.load %arg4[%c0_12, %c0_13, %c0_14] : memref<2x8x8xf32, #tpu.memory_space<vmem>>, vector<1x8x8xf32>
    %29 = vector.shape_cast %28 : vector<1x8x8xf32> to vector<8x8xf32>
    %c0_15 = arith.constant 0 : index
    %c0_16 = arith.constant 0 : index
    %c0_17 = arith.constant 0 : index
    %30 = vector.load %arg5[%c0_15, %c0_16, %c0_17] : memref<2x8x2xf32, #tpu.memory_space<vmem>>, vector<1x8x2xf32>
    %31 = vector.shape_cast %30 : vector<1x8x2xf32> to vector<8x2xf32>
    %cst_18 = arith.constant dense<0.000000e+00> : vector<16x8xf32>
    %32 = tpu.matmul %25, %29, %cst_18 {dimension_numbers = #tpu.dot_dimension_numbers<[1], [0], [0], [1], [0, 0, 1, 1], [], []>} : vector<16x8xf32>, vector<8x8xf32>, vector<16x8xf32> -> vector<16x8xf32>
    %cst_19 = arith.constant dense<0.000000e+00> : vector<16x2xf32>
    %33 = tpu.matmul %25, %31, %cst_19 {dimension_numbers = #tpu.dot_dimension_numbers<[1], [0], [0], [1], [0, 0, 1, 1], [], []>} : vector<16x8xf32>, vector<8x2xf32>, vector<16x2xf32> -> vector<16x2xf32>
    %34 = vector.extract_strided_slice %33 {offsets = [0, 0], sizes = [16, 1], strides = [1, 1]} : vector<16x2xf32> to vector<16x1xf32>
    %35 = vector.extract_strided_slice %33 {offsets = [0, 1], sizes = [16, 1], strides = [1, 1]} : vector<16x2xf32> to vector<16x1xf32>
    %36 = tpu.transpose %35, [1, 0] : vector<16x1xf32> -> vector<1x16xf32>
    %37 = vector.broadcast %34 : vector<16x1xf32> to vector<16x16xf32>
    %38 = vector.broadcast %36 : vector<1x16xf32> to vector<16x16xf32>
    %39 = arith.addf %37, %38 : vector<16x16xf32>
    %cst_20 = arith.constant 0.000000e+00 : f32
    %40 = vector.broadcast %cst_20 : f32 to vector<16x16xf32>
    %41 = arith.cmpf oge, %39, %40 : vector<16x16xf32>
    %cst_21 = arith.constant 0.00999999977 : f32
    %42 = vector.broadcast %cst_21 : f32 to vector<16x16xf32>
    %43 = arith.mulf %42, %39 : vector<16x16xf32>
    %44 = arith.select %41, %39, %43 : vector<16x16xi1>, vector<16x16xf32>
    %cst_22 = arith.constant -1.000000e+30 : f32
    %45 = vector.broadcast %cst_22 : f32 to vector<16x16xf32>
    %46 = arith.select %27, %44, %45 : vector<16x16xi1>, vector<16x16xf32>
    %cst_23 = arith.constant dense<0xFF800000> : vector<16xf32>
    %47 = vector.multi_reduction <maximumf>, %46, %cst_23 [1] : vector<16x16xf32> to vector<16xf32>
    %48 = vector.shape_cast %47 : vector<16xf32> to vector<16x1xf32>
    %49 = vector.broadcast %48 : vector<16x1xf32> to vector<16x16xf32>
    %50 = arith.subf %46, %49 : vector<16x16xf32>
    %51 = math.exp %50 : vector<16x16xf32>
    %cst_24 = arith.constant 0.000000e+00 : f32
    %52 = vector.broadcast %cst_24 : f32 to vector<16x16xf32>
    %53 = arith.select %27, %51, %52 : vector<16x16xi1>, vector<16x16xf32>
    %cst_25 = arith.constant dense<0.000000e+00> : vector<16xf32>
    %54 = vector.multi_reduction <add>, %53, %cst_25 [1] : vector<16x16xf32> to vector<16xf32>
    %55 = vector.shape_cast %54 : vector<16xf32> to vector<16x1xf32>
    %cst_26 = arith.constant 1.000000e-30 : f32
    %56 = vector.broadcast %cst_26 : f32 to vector<16x1xf32>
    %57 = arith.maximumf %55, %56 : vector<16x1xf32>
    %58 = vector.broadcast %57 : vector<16x1xf32> to vector<16x16xf32>
    %59 = arith.divf %53, %58 : vector<16x16xf32>
    %cst_27 = arith.constant dense<0.000000e+00> : vector<16x8xf32>
    %60 = tpu.matmul %59, %32, %cst_27 {dimension_numbers = #tpu.dot_dimension_numbers<[1], [0], [0], [1], [0, 0, 1, 1], [], []>} : vector<16x16xf32>, vector<16x8xf32>, vector<16x8xf32> -> vector<16x8xf32>
    %cst_28 = arith.constant 0.000000e+00 : f32
    %61 = vector.broadcast %cst_28 : f32 to vector<16x8xf32>
    %62 = arith.maximumf %60, %61 : vector<16x8xf32>
    %c1 = arith.constant 1 : index
    %c0_29 = arith.constant 0 : index
    %c0_30 = arith.constant 0 : index
    %63 = vector.load %arg4[%c1, %c0_29, %c0_30] : memref<2x8x8xf32, #tpu.memory_space<vmem>>, vector<1x8x8xf32>
    %64 = vector.shape_cast %63 : vector<1x8x8xf32> to vector<8x8xf32>
    %c1_31 = arith.constant 1 : index
    %c0_32 = arith.constant 0 : index
    %c0_33 = arith.constant 0 : index
    %65 = vector.load %arg5[%c1_31, %c0_32, %c0_33] : memref<2x8x2xf32, #tpu.memory_space<vmem>>, vector<1x8x2xf32>
    %66 = vector.shape_cast %65 : vector<1x8x2xf32> to vector<8x2xf32>
    %cst_34 = arith.constant dense<0.000000e+00> : vector<16x8xf32>
    %67 = tpu.matmul %25, %64, %cst_34 {dimension_numbers = #tpu.dot_dimension_numbers<[1], [0], [0], [1], [0, 0, 1, 1], [], []>} : vector<16x8xf32>, vector<8x8xf32>, vector<16x8xf32> -> vector<16x8xf32>
    %cst_35 = arith.constant dense<0.000000e+00> : vector<16x2xf32>
    %68 = tpu.matmul %25, %66, %cst_35 {dimension_numbers = #tpu.dot_dimension_numbers<[1], [0], [0], [1], [0, 0, 1, 1], [], []>} : vector<16x8xf32>, vector<8x2xf32>, vector<16x2xf32> -> vector<16x2xf32>
    %69 = vector.extract_strided_slice %68 {offsets = [0, 0], sizes = [16, 1], strides = [1, 1]} : vector<16x2xf32> to vector<16x1xf32>
    %70 = vector.extract_strided_slice %68 {offsets = [0, 1], sizes = [16, 1], strides = [1, 1]} : vector<16x2xf32> to vector<16x1xf32>
    %71 = tpu.transpose %70, [1, 0] : vector<16x1xf32> -> vector<1x16xf32>
    %72 = vector.broadcast %69 : vector<16x1xf32> to vector<16x16xf32>
    %73 = vector.broadcast %71 : vector<1x16xf32> to vector<16x16xf32>
    %74 = arith.addf %72, %73 : vector<16x16xf32>
    %cst_36 = arith.constant 0.000000e+00 : f32
    %75 = vector.broadcast %cst_36 : f32 to vector<16x16xf32>
    %76 = arith.cmpf oge, %74, %75 : vector<16x16xf32>
    %cst_37 = arith.constant 0.00999999977 : f32
    %77 = vector.broadcast %cst_37 : f32 to vector<16x16xf32>
    %78 = arith.mulf %77, %74 : vector<16x16xf32>
    %79 = arith.select %76, %74, %78 : vector<16x16xi1>, vector<16x16xf32>
    %cst_38 = arith.constant -1.000000e+30 : f32
    %80 = vector.broadcast %cst_38 : f32 to vector<16x16xf32>
    %81 = arith.select %27, %79, %80 : vector<16x16xi1>, vector<16x16xf32>
    %cst_39 = arith.constant dense<0xFF800000> : vector<16xf32>
    %82 = vector.multi_reduction <maximumf>, %81, %cst_39 [1] : vector<16x16xf32> to vector<16xf32>
    %83 = vector.shape_cast %82 : vector<16xf32> to vector<16x1xf32>
    %84 = vector.broadcast %83 : vector<16x1xf32> to vector<16x16xf32>
    %85 = arith.subf %81, %84 : vector<16x16xf32>
    %86 = math.exp %85 : vector<16x16xf32>
    %cst_40 = arith.constant 0.000000e+00 : f32
    %87 = vector.broadcast %cst_40 : f32 to vector<16x16xf32>
    %88 = arith.select %27, %86, %87 : vector<16x16xi1>, vector<16x16xf32>
    %cst_41 = arith.constant dense<0.000000e+00> : vector<16xf32>
    %89 = vector.multi_reduction <add>, %88, %cst_41 [1] : vector<16x16xf32> to vector<16xf32>
    %90 = vector.shape_cast %89 : vector<16xf32> to vector<16x1xf32>
    %cst_42 = arith.constant 1.000000e-30 : f32
    %91 = vector.broadcast %cst_42 : f32 to vector<16x1xf32>
    %92 = arith.maximumf %90, %91 : vector<16x1xf32>
    %93 = vector.broadcast %92 : vector<16x1xf32> to vector<16x16xf32>
    %94 = arith.divf %88, %93 : vector<16x16xf32>
    %cst_43 = arith.constant dense<0.000000e+00> : vector<16x8xf32>
    %95 = tpu.matmul %94, %67, %cst_43 {dimension_numbers = #tpu.dot_dimension_numbers<[1], [0], [0], [1], [0, 0, 1, 1], [], []>} : vector<16x16xf32>, vector<16x8xf32>, vector<16x8xf32> -> vector<16x8xf32>
    %cst_44 = arith.constant 0.000000e+00 : f32
    %96 = vector.broadcast %cst_44 : f32 to vector<16x8xf32>
    %97 = arith.maximumf %95, %96 : vector<16x8xf32>
    %98 = tpu.concatenate %62, %97 in 1 : vector<16x8xf32>, vector<16x8xf32> -> vector<16x16xf32>
    %c0_45 = arith.constant 0 : index
    %c0_46 = arith.constant 0 : index
    %99 = vector.load %arg6[%c0_45, %c0_46] : memref<16x16xf32, #tpu.memory_space<vmem>>, vector<16x16xf32>
    tpu.vector_store %arg6[%c0_45, %c0_46], %98 {strides = array<i32>} : memref<16x16xf32, #tpu.memory_space<vmem>>, vector<16x16xf32>,
    return
  }
}

</mosaic_0001>

<bundles_post_ra>
// kernel: tpu_custom_call.1
= control target key start
LH: loop header
LB: loop body
LE: loop exit
PB: predicated region body
PF: predicated region fallthrough
CT: control target
= control target key end

     0   :  { %vm28_vm0 = vcmask 64512   ;;  %s1053_s0 = inlined_call_operand.vmem [shape: f32[16,8], index: 0, kind: input, shape index: {}]   ;;  %s1054_s1 = inlined_call_operand.vmem [shape: f32[16,16], index: 1, kind: input, shape index: {}]   ;;  %s1055_s2 = inlined_call_operand.vmem [shape: f32[1,8], index: 2, kind: input, shape index: {}]   ;;  %s1056_s3 = inlined_call_operand.vmem [shape: f32[1,8], index: 3, kind: input, shape index: {}]   ;;  %s1057_s4 = inlined_call_operand.vmem [shape: f32[2,8,8], index: 4, kind: input, shape index: {}]   ;;  %s1058_s5 = inlined_call_operand.vmem [shape: f32[2,8,2], index: 5, kind: input, shape index: {}]   ;;  %s1059_s6 = inlined_call_operand.hbm [shape: f32[16,16], index: 6, kind: output, shape index: {}]  }
   0x1   :  { %v79_v0 = vld [vmem:[%s1058_s5] sm:$0xff]  ;;  %v25_v2 = vld [vmem:[%s1053_s0 + $0x8] sm:$0xff] }
   0x2   :  { %v24_v1 = vld [vmem:[%s1053_s0] sm:$0xff]  ;;  %802 = vmatprep.subr.mxu1 %v79_v0  ;;  %v30_v4 = vsel %vm28_vm0, %v25_v2, 0.0 }
   0x3   :  { %v29_v3 = vsel %vm28_vm0, %v24_v1, 0.0  ;;  %803 = vmatpush3.msra.mxu1 %v79_v0 }
   0x4   :  { %v31_v5 = vadd.f32 %v30_v4, %v29_v3 }
   0x5   :  { %11 = vsyncpa [#allocation3], 0  ;;  %v761_v29 = vld [vmem:[%s1055_s2] ss:$0 sm:$0xff]  ;;  %v889_v37 = vmov 0   ;;  %s890_s2 = smov 127   ;;  %v284_v43 = vlaneseq }
   0x6   :  { %v32_v6 = vrot.slane %v31_v5, 4  ;;  %v762_v32 = vld [vmem:[%s1056_s3] ss:$0 sm:$0xff]  ;;  %845 = vset.pattern.permute.xlu1 %v889_v37  ;;  %v975_v49 = vld [vmem:[%s1054_s1 + $0x8] sm:$0xff]  ;;  %vm298_vm5 = vcmask 130048   ;;  %s892_s13 = smov [#allocation2]  }
   0x7   :  { %v78_v42 = vld [vmem:[%s1057_s4] sm:$0xff]  ;;  %v967_v44 = vshrl.u32 %v284_v43, 7  ;;  %vm77_vm1 = vcmp.gt.f32.partialorder %v975_v49, 0.0  ;;  %s750_s14 = sshll.u32 %s892_s13, 4  ;;  %s751_s14 = int_to_ptr.vmem [resolvable:$true] %s750_s14 }
   0x8   :  { %v33_v7 = vadd.f32 %v32_v6, %v31_v5  ;;  %797 = vmatprep.subr.mxu0 %v78_v42  ;;  %v980_v50 = vld [vmem:[%s1054_s1] sm:$0xff]  ;;  %s865_s15 = scalar_lea.vmem %s751_s14, 256  ;;  %p870_p1 = scmp.lt.s32.totalorder %s751_s14, %s751_s14 }
   0x9   :  { %798 = vmatpush3.msra.mxu0 %v78_v42  ;;  %v286_v46 = vsub.s32 0, %v967_v44  ;;  %vm76_vm2 = vcmp.gt.f32.partialorder %v980_v50, 0.0  ;;  %p866_p0 = scmp.ne.s32.totalorder %s751_s14, %s865_s15  ;;  %p871_p2 = scmp.lt.s32.totalorder %s865_s15, %s865_s15 }
   0xa   :  { %v34_v8 = vrot.slane %v33_v7, 2 }
   0xb   :  { %p872_p3 = por %p871_p2, %p870_p1 }
   0xc   :  { %v35_v9 = vadd.f32 %v34_v8, %v33_v7 }
   0xd   :  { %p873_p4 = pnand %p872_p3, %p866_p0 }
   0xe   :  { %v36_v10 = vrot.slane %v35_v9, 1 }
  0x10   :  { %v37_v11 = vadd.f32 %v36_v10, %v35_v9 }
  0x12   :  { %v39_v12 = vmul.f32 0.0625, %v37_v11 }
  0x14   :  { %v40_v13 = vsub.f32 %v24_v1, %v39_v12  ;;  %v41_v14 = vsub.f32 %v25_v2, %v39_v12 }
  0x16   :  { %v42_v15 = vmul.f32 %v40_v13, %v40_v13  ;;  %v43_v16 = vmul.f32 %v41_v14, %v41_v14 }
  0x18   :  { %v44_v17 = vsel %vm28_vm0, %v42_v15, 0.0  ;;  %v45_v18 = vsel %vm28_vm0, %v43_v16, 0.0 }
  0x19   :  { %v46_v19 = vadd.f32 %v45_v18, %v44_v17 }
  0x1b   :  { %v47_v20 = vrot.slane %v46_v19, 4 }
  0x1d   :  { %v48_v21 = vadd.f32 %v47_v20, %v46_v19 }
  0x1f   :  { %v49_v22 = vrot.slane %v48_v21, 2 }
  0x21   :  { %v50_v23 = vadd.f32 %v49_v22, %v48_v21 }
  0x23   :  { %v51_v24 = vrot.slane %v50_v23, 1 }
  0x25   :  { %v52_v25 = vadd.f32 %v51_v24, %v50_v23 }
  0x27   :  { %v53_v26 = vmul.f32 0.0625, %v52_v25 }
  0x29   :  { %v54_v27 = vadd.f32 1e-05, %v53_v26 }
  0x2b   :  { %847 = vrsqrt.f32 %v54_v27 }
  0x35   :  { %v848_v28 = vpop.eup %847 }
  0x36   :  { %v56_v30 = vmul.f32 %v848_v28, %v40_v13  ;;  %v57_v31 = vmul.f32 %v848_v28, %v41_v14  ;;  %v770_v13 = vld [vmem:[%s1058_s5 + $0x8] sm:$0xff] }
  0x37   :  { %v769_v28 = vld [vmem:[%s1057_s4 + $0x8] sm:$0xff]  ;;  %s891_s4 = smov 8  }
  0x38   :  { %v65_v33 = vmul.f32 %v761_v29, %v56_v30  ;;  %v66_v34 = vmul.f32 %v761_v29, %v57_v31  ;;  %814 = vmatprep.subr.mxu1 %v769_v28 }
  0x3a   :  { %v948_v35 = vadd.f32 %v762_v32, %v65_v33  ;;  %v950_v36 = vadd.f32 %v762_v32, %v66_v34 }
  0x3c   :  { %804 = vmatprep.mubr.msk.f32.mxu1 %vm28_vm0, %v948_v35  ;;  %799 = vmatprep.mubr.msk.f32.mxu0 %vm28_vm0, %v948_v35 }
  0x3d   :  { %805 = vmatmul.mubr.msk.f32.vlgmr.msra.gmra.mrb[0].mxu1 %vm28_vm0, %v950_v36  ;;  %800 = vmatmul.mubr.msk.f32.vlgmr.msra.gmra.mrb[0].mxu0 %vm28_vm0, %v950_v36 }
  0x3e   :  { %816 = vmatprep.mubr.msk.f32.mxu1 %vm28_vm0, %v948_v35  ;;  %815 = vmatpush3.msra.mxu1 %v769_v28 }
  0x41   :  { %817 = vmatmul.mubr.msk.f32.vlgmr.msra.gmra.mrb[2].mxu1 %vm28_vm0, %v950_v36 }
 0x110   :  { %v806_v38 = vpop.f32.mrb[0].mxu1  ;;  %v801_v10 = vpop.f32.mrb[0].mxu0 }
 0x111   :  { %v227_v39 = vpop.f32.mrb[1].mxu1  ;;  %v152_v11 = vpop.f32.mrb[1].mxu0 }
 0x112   :  { %277 = vperm.xlu1 %845, %v227_v39   ;;  %238 = vrot.lane.b32.xlu0 %v227_v39, %s890_s2  ;;  %v831_v12 = vpack.c.bf16 %v801_v10, %v152_v11 }
 0x114   :  { %832 = vmatprep.subr.bf16.mxu0 %v831_v12 }
 0x115   :  { %834 = vmatpush3.bf16.msra.mxu0 %v831_v12 }
 0x116   :  { %281 = vperm.xlu1 %845, %v806_v38   ;;  %240 = vrot.lane.b32.xlu0 %v806_v38, %s890_s2 }
 0x117   :  { %819 = vmatprep.subr.mxu0 %v770_v13 }
 0x184   :  { %v239_v40 = vpop.permute.xlu0 %238 }
 0x185   :  { %244 = vxpose.xlu0.b32.start [1/2] (short) (narrow) %v239_v40, 8 }
 0x188   :  { %v241_v41 = vpop.permute.xlu0 %240 }
 0x189   :  { %245 = vxpose.xlu0.b32.end [2/2] (short) (narrow) %v241_v41, 8 }
 0x191   :  { %v278_v45 = vpop.permute.xlu1 %277 }
 0x195   :  { %v282_v51 = vpop.permute.xlu1 %281 }
 0x1b2   :  { %846 = vset.pattern.permute.xlu0 %v889_v37 }
 0x205   :  { %v260_v47 = vpop.trf.xlu0 }
 0x206   :  { %v287_v48 = vrot.slane %v260_v47, %v286_v46 }
 0x208   :  { %v288_v52 = vadd.f32 %v287_v48, %v278_v45  ;;  %v289_v53 = vadd.f32 %v287_v48, %v282_v51 }
 0x20a   :  { %vm291_vm3 = vcmp.ge.f32.partialorder %v289_v53, 0.0  ;;  %v293_v54 = vmul.f32 0.01, %v289_v53  ;;  %vm290_vm4 = vcmp.ge.f32.partialorder %v288_v52, 0.0  ;;  %v292_v55 = vmul.f32 0.01, %v288_v52 }
 0x20c   :  { %v295_v56 = vsel %vm291_vm3, %v289_v53, %v293_v54  ;;  %v294_v57 = vsel %vm290_vm4, %v288_v52, %v292_v55 }
 0x20d   :  { %v297_v58 = vsel %vm77_vm1, %v295_v56, -1e+30  ;;  %v296_v59 = vsel %vm76_vm2, %v294_v57, -1e+30  ;;  %v818_v57 = vpop.f32.mrb[2].mxu1 }
 0x20e   :  { %v302_v60 = vsel %vm298_vm5, %v297_v58, -inf  ;;  %v299_v61 = vsel %vm298_vm5, %v296_v59, -inf }
 0x20f   :  { %303 = vmax.xlane.f32.xlu0 %v302_v60  ;;  %300 = vmax.xlane.f32.xlu1 %v299_v61 }
 0x29c   :  { %v304_v62 = vpop.xlane.xlu0 %303  ;;  %v301_v63 = vpop.xlane.xlu1 %300 }
 0x29d   :  { %v306_v0 = vsub.f32 %v297_v58, %v304_v62  ;;  %v305_v1 = vsub.f32 %v296_v59, %v301_v63  ;;  %v478_v58 = vpop.f32.mrb[3].mxu1 }
 0x29e   :  { %v835_v59 = vpack.c.bf16 %v818_v57, %v478_v58 }
 0x29f   :  { %v309_v2 = vmul.f32 1.442695, %v306_v0  ;;  %v307_v3 = vmul.f32 1.442695, %v305_v1 }
 0x2a0   :  { %836 = vmatprep.subr.bf16.mxu1 %v835_v59 }
 0x2a1   :  { %849 = vpow2.f32 %v309_v2  ;;  %838 = vmatpush3.bf16.msra.mxu1 %v835_v59 }
 0x2a2   :  { %851 = vpow2.f32 %v307_v3 }
 0x2ab   :  { %v850_v4 = vpop.eup %849 }
 0x2ac   :  { %v852_v5 = vpop.eup %851  ;;  %v312_v8 = vsel %vm77_vm1, %v850_v4, 0.0 }
 0x2ad   :  { %v311_v6 = vsel %vm76_vm2, %v852_v5, 0.0  ;;  %v316_v9 = vsel %vm298_vm5, %v312_v8, 0.0 }
 0x2ae   :  { %v313_v7 = vsel %vm298_vm5, %v311_v6, 0.0 }
 0x2af   :  { %314 = vadd.xlane.f32.xlu1 %v313_v7 }
 0x2b3   :  { %317 = vadd.xlane.f32.xlu1 %v316_v9 }
 0x33c   :  { %v315_v14 = vpop.xlane.xlu1 %314 }
 0x33d   :  { %v319_v15 = vmax.f32 %v315_v14, 1e-30 }
 0x33f   :  { %853 = vrcp.f32 %v319_v15 }
 0x340   :  { %v318_v16 = vpop.xlane.xlu1 %317 }
 0x341   :  { %v320_v17 = vmax.f32 %v318_v16, 1e-30 }
 0x343   :  { %855 = vrcp.f32 %v320_v17 }
 0x349   :  { %v854_v18 = vpop.eup %853 }
 0x34a   :  { %v322_v19 = vmul.f32 %v854_v18, %v311_v6 }
 0x34c   :  { %811 = vmatprep.mubr.msk.f32.mxu0 %vm298_vm5, %v322_v19 }
 0x34d   :  { %v856_v20 = vpop.eup %855 }
 0x34e   :  { %v324_v21 = vmul.f32 %v856_v20, %v312_v8 }
 0x350   :  { %812 = vmatmul.mubr.msk.f32.vlgmr.msra.gmra.mrb[2].mxu0 %vm298_vm5, %v324_v21 }
 0x351   :  { %820 = vmatpush3.msra.mxu0 %v770_v13  ;;  %821 = vmatprep.mubr.msk.f32.mxu0 %vm28_vm0, %v948_v35 }
 0x354   :  { %822 = vmatmul.mubr.msk.f32.vlgmr.msra.gmra.mrb[4].mxu0 %vm28_vm0, %v950_v36 }
 0x423   :  { %v1005_v22 = vpop.f32.mrb[2].mxu0 }
 0x424   :  { %v1007_v23 = vpop.f32.mrb[3].mxu0  ;;  %v407_v9 = vmax.f32 %v1005_v22, 0.0 }
 0x425   :  { %v406_v6 = vmax.f32 %v1007_v23, 0.0 }
 0x427   :  { %v823_v24 = vpop.f32.mrb[4].mxu0 }
 0x428   :  { %v553_v25 = vpop.f32.mrb[5].mxu0 }
 0x429   :  { %564 = vrot.lane.b32.xlu1 %v553_v25, %s890_s2 }
 0x42d   :  { %566 = vrot.lane.b32.xlu1 %v823_v24, %s890_s2 }
 0x431   :  { %607 = vperm.xlu1 %845, %v823_v24  }
 0x435   :  { %603 = vperm.xlu1 %845, %v553_v25  }
 0x49b   :  { %v565_v26 = vpop.permute.xlu1 %564 }
 0x49c   :  { %570 = vxpose.xlu1.b32.start [1/2] (short) (narrow) %v565_v26, 8 }
 0x49f   :  { %v567_v27 = vpop.permute.xlu1 %566 }
 0x4a0   :  { %571 = vxpose.xlu1.b32.end [2/2] (short) (narrow) %v567_v27, 8 }
 0x4b0   :  { %v608_v29 = vpop.permute.xlu1 %607 }
 0x4b4   :  { %v604_v30 = vpop.permute.xlu1 %603 }
 0x51c   :  { %v586_v31 = vpop.trf.xlu1 }
 0x51d   :  { %v613_v32 = vrot.slane %v586_v31, %v286_v46 }
 0x51f   :  { %v614_v33 = vadd.f32 %v613_v32, %v604_v30  ;;  %v615_v34 = vadd.f32 %v613_v32, %v608_v29 }
 0x521   :  { %vm616_vm6 = vcmp.ge.f32.partialorder %v614_v33, 0.0  ;;  %v618_v35 = vmul.f32 0.01, %v614_v33  ;;  %vm617_vm7 = vcmp.ge.f32.partialorder %v615_v34, 0.0  ;;  %v619_v37 = vmul.f32 0.01, %v615_v34 }
 0x523   :  { %v620_v38 = vsel %vm616_vm6, %v614_v33, %v618_v35  ;;  %v621_v39 = vsel %vm617_vm7, %v615_v34, %v619_v37 }
 0x524   :  { %v622_v40 = vsel %vm76_vm2, %v620_v38, -1e+30  ;;  %v623_v36 = vsel %vm77_vm1, %v621_v39, -1e+30 }
 0x525   :  { %v624_v41 = vsel %vm298_vm5, %v622_v40, -inf  ;;  %v627_v42 = vsel %vm298_vm5, %v623_v36, -inf }
 0x526   :  { %625 = vmax.xlane.f32.xlu0 %v624_v41 }
 0x52a   :  { %628 = vmax.xlane.f32.xlu0 %v627_v42 }
 0x5b3   :  { %v626_v43 = vpop.xlane.xlu0 %625 }
 0x5b4   :  { %v630_v44 = vsub.f32 %v622_v40, %v626_v43 }
 0x5b6   :  { %v632_v45 = vmul.f32 1.442695, %v630_v44 }
 0x5b7   :  { %v629_v46 = vpop.xlane.xlu0 %628 }
 0x5b8   :  { %857 = vpow2.f32 %v632_v45  ;;  %v631_v47 = vsub.f32 %v623_v36, %v629_v46 }
 0x5ba   :  { %v634_v48 = vmul.f32 1.442695, %v631_v47 }
 0x5bc   :  { %859 = vpow2.f32 %v634_v48 }
 0x5c2   :  { %v858_v51 = vpop.eup %857 }
 0x5c3   :  { %v636_v52 = vsel %vm76_vm2, %v858_v51, 0.0 }
 0x5c4   :  { %v638_v53 = vsel %vm298_vm5, %v636_v52, 0.0 }
 0x5c5   :  { %639 = vadd.xlane.f32.xlu0 %v638_v53 }
 0x5c6   :  { %v860_v54 = vpop.eup %859 }
 0x5c7   :  { %v637_v55 = vsel %vm77_vm1, %v860_v54, 0.0 }
 0x5c8   :  { %v641_v56 = vsel %vm298_vm5, %v637_v55, 0.0 }
 0x5c9   :  { %642 = vadd.xlane.f32.xlu0 %v641_v56 }
 0x652   :  { %v640_v60 = vpop.xlane.xlu0 %639 }
 0x653   :  { %v644_v61 = vmax.f32 %v640_v60, 1e-30 }
 0x655   :  { %861 = vrcp.f32 %v644_v61 }
 0x656   :  { %v643_v50 = vpop.xlane.xlu0 %642 }
 0x657   :  { %v645_v62 = vmax.f32 %v643_v50, 1e-30 }
 0x659   :  { %863 = vrcp.f32 %v645_v62 }
 0x65f   :  { %v862_v63 = vpop.eup %861 }
 0x660   :  { %v647_v0 = vmul.f32 %v862_v63, %v636_v52 }
 0x662   :  { %828 = vmatprep.mubr.msk.f32.mxu1 %vm298_vm5, %v647_v0 }
 0x663   :  { %v864_v49 = vpop.eup %863 }
 0x664   :  { %v649_v1 = vmul.f32 %v864_v49, %v637_v55 }
 0x666   :  { %829 = vmatmul.mubr.msk.f32.vlgmr.msra.gmra.mrb[4].mxu1 %vm298_vm5, %v649_v1 }
 0x739   :  { %v830_v2 = vpop.f32.mrb[4].mxu1 }
 0x73a   :  { %v722_v3 = vpop.f32.mrb[5].mxu1  ;;  %v732_v5 = vmax.f32 %v830_v2, 0.0 }
 0x73b   :  { %v731_v4 = vmax.f32 %v722_v3, 0.0 }
 0x73d   :  { %735 = vrot.lane.b32.xlu0 %v731_v4, %s891_s4 }
 0x741   :  { %737 = vrot.lane.b32.xlu0 %v732_v5, %s891_s4 }
 0x7af   :  { %v736_v7 = vpop.permute.xlu0 %735 }
 0x7b0   :  { %v741_v8 = vsel %vm28_vm0, %v406_v6, %v736_v7 }
 0x7b1   :  { %743 = vst.msk [vmem:[#allocation2] sm:$0xff] %vm298_vm5, %v741_v8 }
 0x7b3   :  { %v738_v10 = vpop.permute.xlu0 %737 }
 0x7b4   :  { %v742_v11 = vsel %vm28_vm0, %v407_v9, %v738_v10 }
 0x7b5   :  { %744 = vst.msk [vmem:[#allocation2 + $0x8] sm:$0xff] %vm298_vm5, %v742_v11 }
 0x7b6   :  { %876 = shalt.err (!%p873_p4)
}
 0x7b7   :  { %s877_s18 = scalar_lea.hbm %s1059_s6, 256 }
 0x7b8   :  { %p878_p5 = scmp.ne.s32.totalorder %s1059_s6, %s877_s18  ;;  %p881_p6 = scmp.lt.u32.totalorder %s877_s18, %s1059_s6 }
 0x7ba   :  { %p883_p7 = pnand %p881_p6, %p878_p5 }
 0x7bc   :  { %886 = shalt.err (!%p883_p7)
}
 0x7bd   :  { %s893_s23 = smov 128  }
 0x7be   :  { %756 = dma.vmem_to_hbm [thread:$0]  %s751_s14, 256, %s1059_s6, [#allocation3], %s893_s23, %s893_s23, %s891_s4  }
 0x7bf   :  { %887 = dma.done.wait [#allocation3], 256  }
 0x7c0   :  { %888 = vsyncadd [#allocation3], 4294967040 }
 0x7c1   :  { %760 = vsyncpa [#allocation3], 1 }

</bundles_post_ra>
